<compile_context>
chip_gen: v6e
topology: v6e:2x2x1
jax: 0.10.0
libtpu: 0.0.40
codegen_flags: <defaults>
</compile_context>

<pallas_src>
import jax
import jax.numpy as jnp
from jax.experimental import pallas as pl
from jax.experimental.pallas import tpu as pltpu

_MIB = 1024 * 1024
_LANES = 128


def _activation_cube_kernel(x_ref, o_ref):
    # 3 VPU ops/element; compute is fully hidden under the HBM stream.
    x = x_ref[...]
    o_ref[...] = jnp.maximum(x * x * x, jnp.zeros_like(x))


def _cdiv(a: int, b: int) -> int:
    return -(-a // b)


def _round_up(a: int, b: int) -> int:
    return _cdiv(a, b) * b


def _round_down(a: int, b: int) -> int:
    return (a // b) * b


def _chip_defaults():
    """Best-effort chip detection -> (block_bytes, multi_tensorcore)."""
    try:
        kind = jax.devices()[0].device_kind.lower()
    except Exception:
        return 4 * _MIB, False
    if "v5" in kind:
        # ~0.8 TB/s HBM: 2-4 MiB blocks already amortize the 0.35us step cost.
        return 4 * _MIB, False
    if "v7" in kind:
        # 2 TensorCores, ~3.2 TB/s: bigger blocks + keep >=2 parallel steps.
        return 8 * _MIB, True
    # v6e and other single-TC chips.
    return 8 * _MIB, False


def _run_2d(x2d: jax.Array, block_bytes: int, sublanes: int, multi_tc: bool) -> jax.Array:
    """Run the elementwise kernel over a 2-D (R, C) slab with C % 128 == 0."""
    R, C = x2d.shape
    itemsize = jnp.dtype(x2d.dtype).itemsize

    # Row tile targeting ~block_bytes per block, rounded to the dtype's sublane
    # multiple. If the whole slab fits in one block, use the full extent
    # (full-extent dims are exempt from the (sublane,128) divisibility rule).
    tr = max(sublanes, _round_down(max(1, block_bytes // (C * itemsize)), sublanes))
    if tr >= R:
        tr = R

    # v7x megacore: keep >=2 parallel grid steps so both TensorCores stream
    # concurrently. Skipped on single-TC chips (pure overhead there).
    if multi_tc and tr == R and R >= 2 * sublanes:
        tr = min(R, _round_up(_cdiv(R, 2), sublanes))

    grid_n = _cdiv(R, tr)  # ragged last block is edge-clipped by the pipeline

    block_bytes_actual = tr * C * itemsize
    # in + out, double-buffered => ~4x block; leave margin, stay under v7x's
    # 64 MiB physical VMEM.
    vmem_limit = min(48 * _MIB, max(32 * _MIB, 5 * block_bytes_actual))

    return pl.pallas_call(
        _activation_cube_kernel,
        out_shape=jax.ShapeDtypeStruct((R, C), x2d.dtype),
        grid_spec=pltpu.PrefetchScalarGridSpec(
            num_scalar_prefetch=0,
            grid=(grid_n,),
            in_specs=[pl.BlockSpec((tr, C), lambda i: (i, 0))],
            out_specs=pl.BlockSpec((tr, C), lambda i: (i, 0)),
        ),
        compiler_params=pltpu.CompilerParams(
            # Note: if Mosaic serializes this on one v7x core, switching this
            # axis to pltpu.CORE_PARALLEL would shard it across both TCs.
            dimension_semantics=("parallel",),
            vmem_limit_bytes=vmem_limit,
        ),
        cost_estimate=pl.CostEstimate(
            flops=3 * R * C,
            transcendentals=0,
            bytes_accessed=2 * R * C * itemsize,
        ),
    )(x2d)


def activation_cube(x: jax.Array, *, block_bytes: int | None = None) -> jax.Array:
    """Elementwise max(x^3, 0), matching torch.maximum(x**3, tensor(0.))."""
    orig_shape = x.shape
    n = int(x.size)
    if n == 0:
        return x  # empty input: nothing to compute

    itemsize = jnp.dtype(x.dtype).itemsize
    # Dtype-aware sublane multiple: 8 (f32), 16 (bf16/f16), 32 (int8/fp8).
    sublanes = max(8, 32 // itemsize)

    default_bytes, multi_tc = _chip_defaults()
    if block_bytes is None:
        block_bytes = default_bytes

    # ---- Native fast path: trailing dim already lane-dense, and collapsing
    # the leading dims preserves the tiled layout (bitcast reshape). No pad,
    # no relayout copies, no output slice -> minimum possible HBM traffic.
    if (
        x.ndim >= 2
        and x.shape[-1] % _LANES == 0
        and (x.ndim == 2 or x.shape[-2] % sublanes == 0)
        and sublanes * x.shape[-1] * itemsize <= 8 * _MIB
    ):
        C = x.shape[-1]
        R = n // C
        out2d = _run_2d(x.reshape(R, C), block_bytes, sublanes, multi_tc)
        return out2d.reshape(orig_shape)

    # ---- Fallback: flatten into a lane-dense (R, L) slab. Pad only to a
    # multiple of L (<= L-1 extra elements); the ragged last *row-block* is
    # handled by Pallas edge clipping, so no tile-sized over-padding.
    L = 1024 if n >= sublanes * 1024 else _LANES
    R = _cdiv(n, L)
    flat = x.reshape(-1)
    padded = (R * L) != n
    if padded:
        flat = jnp.pad(flat, (0, R * L - n))
    out2d = _run_2d(flat.reshape(R, L), block_bytes, sublanes, multi_tc)
    out = out2d.reshape(-1)
    if padded:
        out = out[:n]
    return out.reshape(orig_shape)


if __name__ == "__main__":
    key = jax.random.PRNGKey(0)

    # Small NCHW-like input consistent with how the activation would be used.
    x = jax.random.normal(key, (2, 4, 16, 16), dtype=jnp.float32)
    out = jax.block_until_ready(activation_cube(x))
    ref = jnp.maximum(x ** 3, 0.0)
    assert out.shape == x.shape and out.dtype == x.dtype
    assert jnp.allclose(out, ref, atol=1e-6, rtol=1e-6), "mismatch vs reference"

    # Doctest-style checks: f(2) = 8, f(-2) = 0 (1-D and 0-D scalar).
    s = jax.block_until_ready(activation_cube(jnp.array([2.0, -2.0], jnp.float32)))
    assert jnp.allclose(s, jnp.array([8.0, 0.0])), "scalar check failed"
    s0 = jax.block_until_ready(activation_cube(jnp.array(2.0, jnp.float32)))
    assert jnp.allclose(s0, 8.0), "0-d scalar check failed"

    # Awkward size -> fallback path with minimal (<L) padding.
    y = jax.random.normal(jax.random.PRNGKey(1), (3, 7, 37, 53), jnp.float32)
    out_y = jax.block_until_ready(activation_cube(y))
    assert jnp.allclose(out_y, jnp.maximum(y ** 3, 0.0), atol=1e-6, rtol=1e-6)

    # Lane-dense input -> native fast path (no pad, no relayout).
    z = jax.random.normal(jax.random.PRNGKey(2), (4, 16, 256), jnp.float32)
    out_z = jax.block_until_ready(activation_cube(z))
    assert jnp.allclose(out_z, jnp.maximum(z ** 3, 0.0), atol=1e-6, rtol=1e-6)

    # Tiny forced block -> exercises the ragged, edge-clipped grid path.
    w = jax.random.normal(jax.random.PRNGKey(3), (20, 128), jnp.float32)
    out_w = jax.block_until_ready(activation_cube(w, block_bytes=8 * 128 * 4))
    assert jnp.allclose(out_w, jnp.maximum(w ** 3, 0.0), atol=1e-6, rtol=1e-6)

    # bf16 exercises the dtype-aware (16, 128) tiling.
    b = jax.random.normal(jax.random.PRNGKey(4), (2, 32, 256), dtype=jnp.bfloat16)
    out_b = jax.block_until_ready(activation_cube(b))
    ref_b = jnp.maximum(b.astype(jnp.float32) ** 3, 0.0)
    assert out_b.dtype == jnp.bfloat16
    assert jnp.allclose(out_b.astype(jnp.float32), ref_b, atol=1e-2, rtol=5e-2)

    print("KERNEL_OK")
</pallas_src>

<mosaic_0001>
module attributes {stable_mosaic.version = 11 : i64} {
  func.func @_activation_cube_kernel(%arg0: i32, %arg1: memref<16x128xf32, #tpu.memory_space<vmem>>, %arg2: memref<16x128xf32, #tpu.memory_space<vmem>>) attributes {dimension_semantics = [#tpu.dimension_semantics<parallel>], iteration_bounds = array<i64: 1>, scalar_prefetch = 0 : i64, scratch_operands = 0 : i64, tpu.core_type = #tpu.core_type<tc>, window_params = [{transform_indices = @transform_0, window_bounds = array<i64: 16, 128>}, {transform_indices = @transform_1, window_bounds = array<i64: 16, 128>}]} {
    %c0 = arith.constant 0 : index
    %c0_0 = arith.constant 0 : index
    %0 = vector.load %arg1[%c0, %c0_0] : memref<16x128xf32, #tpu.memory_space<vmem>>, vector<16x128xf32>
    %1 = arith.mulf %0, %0 : vector<16x128xf32>
    %2 = arith.mulf %1, %0 : vector<16x128xf32>
    %cst = arith.constant 0.000000e+00 : f32
    %3 = vector.broadcast %cst : f32 to vector<16x128xf32>
    %4 = arith.maximumf %2, %3 : vector<16x128xf32>
    %c0_1 = arith.constant 0 : index
    %c0_2 = arith.constant 0 : index
    %5 = vector.load %arg2[%c0_1, %c0_2] : memref<16x128xf32, #tpu.memory_space<vmem>>, vector<16x128xf32>
    tpu.vector_store %arg2[%c0_1, %c0_2], %4 {strides = array<i32>} : memref<16x128xf32, #tpu.memory_space<vmem>>, vector<16x128xf32>,
    return
  }
  func.func @transform_0(%arg0: i32) -> (i32, i32) {
    %c0_i32 = arith.constant 0 : i32
    %c0_i32_0 = arith.constant 0 : i32
    return %arg0, %c0_i32 : i32, i32
  }
  func.func @transform_1(%arg0: i32) -> (i32, i32) {
    %c0_i32 = arith.constant 0 : i32
    %c0_i32_0 = arith.constant 0 : i32
    return %arg0, %c0_i32 : i32, i32
  }
}

</mosaic_0001>

<bundles_post_ra>
// kernel: tpu_custom_call.1
= control target key start
LH: loop header
LB: loop body
LE: loop exit
PB: predicated region body
PF: predicated region fallthrough
CT: control target
= control target key end

     0   :  { %6 = vsyncpa [#allocation3], 0  ;;  %s118_s0 = inlined_call_operand.hbm [shape: f32[16,128], index: 0, kind: input, shape index: {}]   ;;  %s119_s1 = inlined_call_operand.hbm [shape: f32[16,128], index: 1, kind: output, shape index: {}]  }
   0x1   :  { %7 = vsyncpa [#allocation4], 0  ;;  %s98_s6 = smov [#allocation2]  }
   0x2   :  { %s13_s7 = sshll.u32 %s98_s6, 4  ;;  %s14_s7 = int_to_ptr.vmem [resolvable:$true] %s13_s7 }
   0x3   :  { %s62_s8 = scalar_lea.vmem %s14_s7, 256  ;;  %p67_p1 = scmp.lt.s32.totalorder %s14_s7, %s14_s7 }
   0x4   :  { %p63_p0 = scmp.ne.s32.totalorder %s14_s7, %s62_s8  ;;  %p68_p2 = scmp.lt.s32.totalorder %s62_s8, %s62_s8 }
   0x6   :  { %p69_p3 = por %p68_p2, %p67_p1 }
   0x8   :  { %p70_p4 = pnand %p69_p3, %p63_p0 }
   0xa   :  { %73 = shalt.err (!%p70_p4)
}
   0xb   :  { %s99_s9 = smov 128   ;;  %s100_s10 = smov 8  }
   0xc   :  { %19 = dma.hbm_to_vmem [thread:$0]  %s118_s0, 256, %s14_s7, [#allocation3], %s99_s9, %s99_s9, %s100_s10  }
   0xd   :  { %94 = dma.done.wait [#allocation3], 256  }
   0xe   :  { %95 = vsyncadd [#allocation3], 4294967040  ;;  %v23_v0 = vld [vmem:[#allocation2] sm:$0xff]  ;;  %v24_v1 = vld [vmem:[#allocation2 + $0x8] sm:$0xff]  ;;  %s101_s13 = smov [#allocation5]  }
   0xf   :  { %v25_v2 = vmul.f32 %v23_v0, %v23_v0  ;;  %v26_v3 = vmul.f32 %v24_v1, %v24_v1  ;;  %s38_s14 = sshll.u32 %s101_s13, 4  ;;  %s39_s14 = int_to_ptr.vmem [resolvable:$true] %s38_s14 }
  0x10   :  { %s74_s15 = scalar_lea.vmem %s39_s14, 256  ;;  %p79_p6 = scmp.lt.s32.totalorder %s39_s14, %s39_s14 }
  0x11   :  { %v27_v4 = vmul.f32 %v25_v2, %v23_v0  ;;  %v28_v5 = vmul.f32 %v26_v3, %v24_v1  ;;  %p75_p5 = scmp.ne.s32.totalorder %s39_s14, %s74_s15  ;;  %p80_p7 = scmp.lt.s32.totalorder %s74_s15, %s74_s15 }
  0x13   :  { %v29_v6 = vmax.f32 %v27_v4, 0.0  ;;  %v30_v7 = vmax.f32 %v28_v5, 0.0  ;;  %p81_p8 = por %p80_p7, %p79_p6 }
  0x15   :  { %31 = vst [vmem:[#allocation5] sm:$0xff] %v29_v6  ;;  %32 = vst [vmem:[#allocation5 + $0x8] sm:$0xff] %v30_v7  ;;  %p82_p9 = pnand %p81_p8, %p75_p5 }
  0x17   :  { %85 = shalt.err (!%p82_p9)
}
  0x18   :  { %44 = dma.vmem_to_hbm [thread:$0]  %s39_s14, 256, %s119_s1, [#allocation4], %s99_s9, %s99_s9, %s100_s10  }
  0x19   :  { %96 = dma.done.wait [#allocation4], 256  }
  0x1a   :  { %97 = vsyncadd [#allocation4], 4294967040 }
  0x1b   :  { %48 = vsyncpa [#allocation3], 1 }
  0x1c   :  { %49 = vsyncpa [#allocation4], 1 }

</bundles_post_ra>
